<compile_context>
chip_gen: v6e
topology: v6e:2x2x1
jax: 0.10.0
libtpu: 0.0.40
codegen_flags: <defaults>
</compile_context>

<pallas_src>
import jax
import jax.numpy as jnp
from jax.experimental import pallas as pl
from jax.experimental.pallas import tpu as pltpu


def simnet_kernel(x_ref, y_ref, w1a_ref, w1b_ref, b1_ref, w2d_ref, b2d_ref, o_ref):
    # fc1 over cat((x, y), dim=1) == two split matmuls (no lane-axis relayout).
    h = jnp.dot(x_ref[...], w1a_ref[...], preferred_element_type=jnp.float32)
    h = h + jnp.dot(y_ref[...], w1b_ref[...], preferred_element_type=jnp.float32)
    h = jnp.maximum(h + b1_ref[...], 0.0)                                   # [TB, 35]

    # fc2 (out_features=2) reduced to the logit difference, computed on the MXU
    # (the MXU is far from saturated with K=30/35, N=35/1 pushes).
    d = jnp.dot(h, w2d_ref[...], preferred_element_type=jnp.float32)        # [TB, 1]
    d = d + b2d_ref[...]

    # softmax over 2 classes == sigmoid(d) == 0.5 + 0.5*tanh(0.5*d)
    # (single EUP op, numerically stable, no branch / select / reciprocal).
    p1 = 0.5 + 0.5 * jnp.tanh(0.5 * d)                                      # [TB, 1]

    # Two direct column stores instead of a lane-axis concatenate.
    o_ref[:, 0:1] = (1.0 - p1).astype(o_ref.dtype)
    o_ref[:, 1:2] = p1.astype(o_ref.dtype)


def _round_up(v, m):
    return ((v + m - 1) // m) * m


def similarity_net(x, y, w1, b1, w2, b2, *, tb=4096):
    """x, y: [B, 30] f32.  Weights stored as (in_features, out_features):
    w1: [60, 35], b1: [35]/[1,35], w2: [35, 2], b2: [2]/[1,2]."""
    B = x.shape[0]
    x = x.astype(jnp.float32)
    y = y.astype(jnp.float32)
    b1 = b1.reshape(1, 35).astype(jnp.float32)
    w2 = w2.astype(jnp.float32)
    b2 = b2.reshape(-1).astype(jnp.float32)

    # Split W1 so the kernel never concatenates x and y along the lane axis.
    w1a = w1[:30].astype(jnp.float32)                      # [30, 35]
    w1b = w1[30:].astype(jnp.float32)                      # [30, 35]
    # 2-class softmax of fc2 depends only on the logit difference; keep the
    # difference weight as a (35, 1) column so fc2 runs on the MXU.
    w2d = (w2[:, 1] - w2[:, 0]).reshape(35, 1)             # [35, 1]
    b2d = (b2[1] - b2[0]).reshape(1, 1)                    # [1, 1]

    # Batch tile selection:
    #   * cap at `tb` (default 4096) -> ~2 MiB per lane-padded (TB,128) f32
    #     buffer, total pipelined VMEM ~20-24 MiB, safe under the explicit
    #     48 MiB limit on every generation (v7x physical is 64 MiB/TC).
    #   * for mid-sized B, ensure >= 2 grid steps so the "parallel" batch axis
    #     is sharded across both v7x TensorCores instead of leaving one idle.
    tb_cap = max(8, _round_up(min(tb, 4096), 8))
    if B <= 8:
        TB = 8
    else:
        half = -(-B // 2)                                  # ceil(B/2)
        TB = min(tb_cap, _round_up(half, 8))
    Bp = _round_up(B, TB)
    if Bp != B:
        pad = ((0, Bp - B), (0, 0))
        x = jnp.pad(x, pad)
        y = jnp.pad(y, pad)
    nb = Bp // TB

    cost = pl.CostEstimate(
        flops=2 * Bp * 60 * 35 + 2 * Bp * 35 + 4 * Bp,
        transcendentals=Bp,  # one tanh per row
        bytes_accessed=4 * (2 * Bp * 30 + Bp * 2 + 2 * 30 * 35 + 35 + 35 + 1),
    )

    out = pl.pallas_call(
        simnet_kernel,
        out_shape=jax.ShapeDtypeStruct((Bp, 2), jnp.float32),
        grid=(nb,),
        in_specs=[
            pl.BlockSpec((TB, 30), lambda i: (i, 0)),   # x tile (pipelined)
            pl.BlockSpec((TB, 30), lambda i: (i, 0)),   # y tile (pipelined)
            pl.BlockSpec((30, 35), lambda i: (0, 0)),   # W1[:30]  (VMEM-resident)
            pl.BlockSpec((30, 35), lambda i: (0, 0)),   # W1[30:]  (VMEM-resident)
            pl.BlockSpec((1, 35), lambda i: (0, 0)),    # b1       (VMEM-resident)
            pl.BlockSpec((35, 1), lambda i: (0, 0)),    # w2[:,1]-w2[:,0] as column
            pl.BlockSpec((1, 1), lambda i: (0, 0)),     # b2[1]-b2[0]
        ],
        out_specs=pl.BlockSpec((TB, 2), lambda i: (i, 0)),
        compiler_params=pltpu.CompilerParams(
            dimension_semantics=("parallel",),     # shard batch tiles across TCs (v7x)
            vmem_limit_bytes=48 * 1024 * 1024,     # explicit: above v5e's 16 MiB /
                                                   # v6e-v7x's 32 MiB scoped defaults
        ),
        cost_estimate=cost,
    )(x, y, w1a, w1b, b1, w2d, b2d)
    return out[:B]


def init_params(key):
    # Deterministic init mimicking PyTorch Linear default (uniform +-1/sqrt(fan_in)).
    k1, k2, k3, k4 = jax.random.split(key, 4)
    bound1 = 1.0 / jnp.sqrt(60.0)
    bound2 = 1.0 / jnp.sqrt(35.0)
    w1 = jax.random.uniform(k1, (60, 35), jnp.float32, -bound1, bound1)
    b1 = jax.random.uniform(k2, (1, 35), jnp.float32, -bound1, bound1)
    w2 = jax.random.uniform(k3, (35, 2), jnp.float32, -bound2, bound2)
    b2 = jax.random.uniform(k4, (1, 2), jnp.float32, -bound2, bound2)
    return w1, b1, w2, b2


def reference(x, y, w1, b1, w2, b2):
    z = jnp.concatenate([x, y], axis=1)
    h = jnp.maximum(z @ w1 + b1, 0.0)
    logits = h @ w2 + b2
    return jax.nn.softmax(logits, axis=1)


if __name__ == "__main__":
    key = jax.random.PRNGKey(0)
    kx, ky, kp = jax.random.split(key, 3)
    B = 20  # small; exercises padding and a 2-step (megacore-shardable) grid
    x = jax.random.normal(kx, (B, 30), jnp.float32)
    y = jax.random.normal(ky, (B, 30), jnp.float32)
    w1, b1, w2, b2 = init_params(kp)

    out = jax.block_until_ready(similarity_net(x, y, w1, b1, w2, b2))
    ref = reference(x, y, w1, b1, w2, b2)

    assert out.shape == (B, 2)
    assert jnp.allclose(out, ref, atol=1e-4, rtol=1e-4)
    assert jnp.allclose(jnp.sum(out, axis=1), 1.0, atol=1e-6)
    print("KERNEL_OK")
</pallas_src>

<mosaic_0001>
module attributes {stable_mosaic.version = 11 : i64} {
  func.func @simnet_kernel(%arg0: i32, %arg1: memref<16x30xf32, #tpu.memory_space<vmem>>, %arg2: memref<16x30xf32, #tpu.memory_space<vmem>>, %arg3: memref<30x35xf32, #tpu.memory_space<vmem>>, %arg4: memref<30x35xf32, #tpu.memory_space<vmem>>, %arg5: memref<1x35xf32, #tpu.memory_space<vmem>>, %arg6: memref<35x1xf32, #tpu.memory_space<vmem>>, %arg7: memref<1x1xf32, #tpu.memory_space<vmem>>, %arg8: memref<16x2xf32, #tpu.memory_space<vmem>>) attributes {dimension_semantics = [#tpu.dimension_semantics<parallel>], iteration_bounds = array<i64: 2>, scalar_prefetch = 0 : i64, scratch_operands = 0 : i64, tpu.core_type = #tpu.core_type<tc>, window_params = [{transform_indices = @transform_0, window_bounds = array<i64: 16, 30>}, {transform_indices = @transform_1, window_bounds = array<i64: 16, 30>}, {pipeline_mode = #tpu.pipeline_mode<synchronous>, transform_indices = @transform_2, window_bounds = array<i64: 30, 35>}, {pipeline_mode = #tpu.pipeline_mode<synchronous>, transform_indices = @transform_3, window_bounds = array<i64: 30, 35>}, {pipeline_mode = #tpu.pipeline_mode<synchronous>, transform_indices = @transform_4, window_bounds = array<i64: 1, 35>}, {pipeline_mode = #tpu.pipeline_mode<synchronous>, transform_indices = @transform_5, window_bounds = array<i64: 35, 1>}, {pipeline_mode = #tpu.pipeline_mode<synchronous>, transform_indices = @transform_6, window_bounds = array<i64: 1, 1>}, {transform_indices = @transform_7, window_bounds = array<i64: 16, 2>}]} {
    %c0 = arith.constant 0 : index
    %c0_0 = arith.constant 0 : index
    %0 = vector.load %arg1[%c0, %c0_0] : memref<16x30xf32, #tpu.memory_space<vmem>>, vector<16x30xf32>
    %c0_1 = arith.constant 0 : index
    %c0_2 = arith.constant 0 : index
    %1 = vector.load %arg3[%c0_1, %c0_2] : memref<30x35xf32, #tpu.memory_space<vmem>>, vector<30x35xf32>
    %cst = arith.constant dense<0.000000e+00> : vector<16x35xf32>
    %2 = tpu.matmul %0, %1, %cst {dimension_numbers = #tpu.dot_dimension_numbers<[1], [0], [0], [1], [0, 0, 1, 1], [], []>} : vector<16x30xf32>, vector<30x35xf32>, vector<16x35xf32> -> vector<16x35xf32>
    %c0_3 = arith.constant 0 : index
    %c0_4 = arith.constant 0 : index
    %3 = vector.load %arg2[%c0_3, %c0_4] : memref<16x30xf32, #tpu.memory_space<vmem>>, vector<16x30xf32>
    %c0_5 = arith.constant 0 : index
    %c0_6 = arith.constant 0 : index
    %4 = vector.load %arg4[%c0_5, %c0_6] : memref<30x35xf32, #tpu.memory_space<vmem>>, vector<30x35xf32>
    %cst_7 = arith.constant dense<0.000000e+00> : vector<16x35xf32>
    %5 = tpu.matmul %3, %4, %cst_7 {dimension_numbers = #tpu.dot_dimension_numbers<[1], [0], [0], [1], [0, 0, 1, 1], [], []>} : vector<16x30xf32>, vector<30x35xf32>, vector<16x35xf32> -> vector<16x35xf32>
    %6 = arith.addf %2, %5 : vector<16x35xf32>
    %c0_8 = arith.constant 0 : index
    %c0_9 = arith.constant 0 : index
    %7 = vector.load %arg5[%c0_8, %c0_9] : memref<1x35xf32, #tpu.memory_space<vmem>>, vector<1x35xf32>
    %8 = vector.broadcast %7 : vector<1x35xf32> to vector<16x35xf32>
    %9 = arith.addf %6, %8 : vector<16x35xf32>
    %cst_10 = arith.constant 0.000000e+00 : f32
    %10 = vector.broadcast %cst_10 : f32 to vector<16x35xf32>
    %11 = arith.maximumf %9, %10 : vector<16x35xf32>
    %c0_11 = arith.constant 0 : index
    %c0_12 = arith.constant 0 : index
    %12 = vector.load %arg6[%c0_11, %c0_12] : memref<35x1xf32, #tpu.memory_space<vmem>>, vector<35x1xf32>
    %cst_13 = arith.constant dense<0.000000e+00> : vector<16x1xf32>
    %13 = tpu.matmul %11, %12, %cst_13 {dimension_numbers = #tpu.dot_dimension_numbers<[1], [0], [0], [1], [0, 0, 1, 1], [], []>} : vector<16x35xf32>, vector<35x1xf32>, vector<16x1xf32> -> vector<16x1xf32>
    %c0_14 = arith.constant 0 : index
    %c0_15 = arith.constant 0 : index
    %14 = vector.load %arg7[%c0_14, %c0_15] : memref<1x1xf32, #tpu.memory_space<vmem>>, vector<1x1xf32>
    %15 = vector.broadcast %14 : vector<1x1xf32> to vector<16x1xf32>
    %16 = arith.addf %13, %15 : vector<16x1xf32>
    %cst_16 = arith.constant 5.000000e-01 : f32
    %17 = vector.broadcast %cst_16 : f32 to vector<16x1xf32>
    %18 = arith.mulf %17, %16 : vector<16x1xf32>
    %19 = math.tanh %18 : vector<16x1xf32>
    %cst_17 = arith.constant 5.000000e-01 : f32
    %20 = vector.broadcast %cst_17 : f32 to vector<16x1xf32>
    %21 = arith.mulf %20, %19 : vector<16x1xf32>
    %cst_18 = arith.constant 5.000000e-01 : f32
    %22 = vector.broadcast %cst_18 : f32 to vector<16x1xf32>
    %23 = arith.addf %22, %21 : vector<16x1xf32>
    %cst_19 = arith.constant 1.000000e+00 : f32
    %24 = vector.broadcast %cst_19 : f32 to vector<16x1xf32>
    %25 = arith.subf %24, %23 : vector<16x1xf32>
    %c0_20 = arith.constant 0 : index
    %c0_21 = arith.constant 0 : index
    %26 = vector.load %arg8[%c0_20, %c0_21] : memref<16x2xf32, #tpu.memory_space<vmem>>, vector<16x1xf32>
    tpu.vector_store %arg8[%c0_20, %c0_21], %25 {strides = array<i32>} : memref<16x2xf32, #tpu.memory_space<vmem>>, vector<16x1xf32>,
    %c0_22 = arith.constant 0 : index
    %c1 = arith.constant 1 : index
    %27 = vector.load %arg8[%c0_22, %c1] : memref<16x2xf32, #tpu.memory_space<vmem>>, vector<16x1xf32>
    tpu.vector_store %arg8[%c0_22, %c1], %23 {strides = array<i32>} : memref<16x2xf32, #tpu.memory_space<vmem>>, vector<16x1xf32>,
    return
  }
  func.func @transform_0(%arg0: i32) -> (i32, i32) {
    %c0_i32 = arith.constant 0 : i32
    %c0_i32_0 = arith.constant 0 : i32
    return %arg0, %c0_i32 : i32, i32
  }
  func.func @transform_1(%arg0: i32) -> (i32, i32) {
    %c0_i32 = arith.constant 0 : i32
    %c0_i32_0 = arith.constant 0 : i32
    return %arg0, %c0_i32 : i32, i32
  }
  func.func @transform_2(%arg0: i32) -> (i32, i32) {
    %c0_i32 = arith.constant 0 : i32
    %c0_i32_0 = arith.constant 0 : i32
    %c0_i32_1 = arith.constant 0 : i32
    return %c0_i32, %c0_i32_0 : i32, i32
  }
  func.func @transform_3(%arg0: i32) -> (i32, i32) {
    %c0_i32 = arith.constant 0 : i32
    %c0_i32_0 = arith.constant 0 : i32
    %c0_i32_1 = arith.constant 0 : i32
    return %c0_i32, %c0_i32_0 : i32, i32
  }
  func.func @transform_4(%arg0: i32) -> (i32, i32) {
    %c0_i32 = arith.constant 0 : i32
    %c0_i32_0 = arith.constant 0 : i32
    %c0_i32_1 = arith.constant 0 : i32
    return %c0_i32, %c0_i32_0 : i32, i32
  }
  func.func @transform_5(%arg0: i32) -> (i32, i32) {
    %c0_i32 = arith.constant 0 : i32
    %c0_i32_0 = arith.constant 0 : i32
    %c0_i32_1 = arith.constant 0 : i32
    return %c0_i32, %c0_i32_0 : i32, i32
  }
  func.func @transform_6(%arg0: i32) -> (i32, i32) {
    %c0_i32 = arith.constant 0 : i32
    %c0_i32_0 = arith.constant 0 : i32
    %c0_i32_1 = arith.constant 0 : i32
    return %c0_i32, %c0_i32_0 : i32, i32
  }
  func.func @transform_7(%arg0: i32) -> (i32, i32) {
    %c0_i32 = arith.constant 0 : i32
    %c0_i32_0 = arith.constant 0 : i32
    return %arg0, %c0_i32 : i32, i32
  }
}

</mosaic_0001>

<bundles_post_ra>
// kernel: tpu_custom_call.1
= control target key start
LH: loop header
LB: loop body
LE: loop exit
PB: predicated region body
PF: predicated region fallthrough
CT: control target
= control target key end

     0   :  { %s1273_s0 = inlined_call_operand.vmem [shape: f32[32,30], index: 0, kind: input, shape index: {}]   ;;  %s1274_s1 = inlined_call_operand.hbm [shape: f32[32,30], index: 1, kind: input, shape index: {}]   ;;  %s1275_s2 = inlined_call_operand.hbm [shape: f32[30,35], index: 2, kind: input, shape index: {}]   ;;  %s1276_s3 = inlined_call_operand.hbm [shape: f32[30,35], index: 3, kind: input, shape index: {}]   ;;  %s1277_s4 = inlined_call_operand.vmem [shape: f32[1,35], index: 4, kind: input, shape index: {}]   ;;  %s1278_s5 = inlined_call_operand.vmem [shape: f32[35,1], index: 5, kind: input, shape index: {}]   ;;  %s1279_s6 = inlined_call_operand.<no memory space> [shape: f32[1,1], index: 6, kind: input, shape index: {}]   ;;  %s1280_s7 = inlined_call_operand.vmem [shape: f32[32,2], index: 7, kind: output, shape index: {}]  }
   0x1   :  { %v12_v0 = vstv %s1279_s6 }
   0x2   :  { %13 = vst [vmem:[#allocation2] sm:$0x1] %v12_v0 }
   0x3   :  { %14 = vsyncpa [#allocation4], 0 }
   0x4   :  { %16 = vsyncpa [#allocation4 + $0x1], 0 }
   0x5   :  { %17 = vsyncpa [#allocation6], 0  ;;  %s1088_s26 = smov 0   ;;  %s1090_s27 = smov 0  }
   0x6   :  { %s1092_s28 = smov 0   ;;  %s1094_s29 = smov 0  }
   0x7 LB: > { %s767_s6 = sadd.s32 4294967295, %s1037_s29   ;;  %p69_p0 = scmp.ne.s32.totalorder %s1029_s27, %s1025_s26  ;;  %s1037_s29 = sphi %s1094_s29, %s1296_s29   ;;  %s1033_s28 = sphi %s1092_s28, %s1295_s28   ;;  %s1029_s27 = sphi %s1090_s27, %s1294_s27   ;;  %s1025_s26 = sphi %s1088_s26, %s1293_s26  }
   0x8   : > { %p1110_p1 = scmp.eq.s32.totalorder %s767_s6, 0  ;;  %p769_p2 = scmp.ge.s32.totalorder %s1037_s29, 1 }
   0x9   : > { %p211_p3 = scmp.lt.s32.totalorder %s1037_s29, 3  ;;  %s1039_s10 = smov [#allocation5]  }
   0xa   : > { %s1285_s30 = scalar_select %p1110_p1, 1, 0 }
   0xb   : > { %p1118_p4 = por %p1110_p1, %p69_p0  ;;  %p1122_p5 = pnand %p769_p2, %p211_p3 }
   0xc   : > { %s223_s11 = sshll.u32 %s1039_s10, 4  ;;  %s1040_s13 = smov [#allocation7]   ;;  %s224_s11 = int_to_ptr.vmem [resolvable:$true] %s223_s11 }
   0xd   : > { %s1286_s8 = scalar_select %p1118_p4, 1, 0 }
   0xe   : > { %s1287_s9 = scalar_select %p1122_p5, 1, 0 }
   0xf   : > { %p862_p6 = pneg %p1122_p5  ;;  %s236_s14 = sshll.u32 %s1040_s13, 4  ;;  %s237_s14 = int_to_ptr.vmem [resolvable:$true] %s236_s14 }
  0x10   : > { %s930_s15 = scalar_lea.vmem %s224_s11, 512  ;;  %p938_p12 = scmp.lt.s32.totalorder %s224_s11, %s224_s11 }
  0x11   : > { %p1130_p7 = pnand %p862_p6, %p1110_p1  ;;  %p931_p9 = scmp.ne.s32.totalorder %s224_s11, %s930_s15 }
  0x12   : > { %p939_p13 = scmp.lt.s32.totalorder %s930_s15, %s930_s15 }
  0x13   : > { %p921_p8 = pneg %p1130_p7 }
  0x14   : > { %p940_p0 = por %p939_p13, %p938_p12 }
  0x15   : > { %p933_p10 = pnand %p931_p9, %p921_p8 }
  0x17   : > { %p934_p11 = pneg %p933_p10 }
  0x19   : > { %p941_p2 = pnand %p940_p0, %p934_p11 }
  0x1b   : > { %944 = shalt.err (!%p941_p2)
}
  0x1c   : > { %s1041_s16 = smov 128   ;;  %s1042_s17 = smov 8  }
  0x1d   : > { %865 = dma.hbm_to_vmem [thread:$0]  (!%p1130_p7), %s1275_s2, 512, %s224_s11, [#allocation6], %s1041_s16, %s1041_s16, %s1042_s17  }
  0x1e   : > { %s956_s20 = scalar_lea.vmem %s237_s14, 512  ;;  %p964_p10 = scmp.lt.s32.totalorder %s237_s14, %s237_s14 }
  0x1f   : > { %p957_p3 = scmp.ne.s32.totalorder %s237_s14, %s956_s20  ;;  %p965_p11 = scmp.lt.s32.totalorder %s956_s20, %s956_s20 }
  0x21   : > { %p959_p6 = pnand %p957_p3, %p921_p8  ;;  %p966_p12 = por %p965_p11, %p964_p10 }
  0x23   : > { %p960_p9 = pneg %p959_p6 }
  0x25   : > { %p967_p13 = pnand %p966_p12, %p960_p9 }
  0x27   : > { %970 = shalt.err (!%p967_p13)
}
  0x28   : > { %868 = dma.hbm_to_vmem [thread:$0]  (!%p1130_p7), %s1276_s3, 512, %s237_s14, [#allocation6], %s1041_s16, %s1041_s16, %s1042_s17  }
  0x29   : > { %s1159_s23 = sadd.s32 1, %s1037_s29   ;;  %s56_s24 = sadd.s32 1, %s1033_s28 }
  0x2a   : > { %s53_s25 = ssub.s32 %s1037_s29, %s1159_s23  ;;  %p63_p8 = scmp.ne.s32.totalorder %s1033_s28, %s1029_s27 }
  0x2b   : > { %p54_p0 = scmp.eq.s32.totalorder %s53_s25, 0  ;;  %p64_p2 = scmp.eq.s32.totalorder %s1037_s29, 0 }
  0x2c   : > { %p875_p3 = scmp.lt.s32.totalorder %s1037_s29, 2  ;;  %s268_s26 = sand.u32 1, %s1033_s28  }
  0x2d   : > { %s1170_s10 = scalar_select %p54_p0, %s1033_s28, %s56_s24  }
  0x2e   : > { %p65_p6 = por %p64_p2, %p63_p8  ;;  %s773_s11 = sshll.u32 %s268_s26, 4 }
  0x2f   : > { %s797_s12 = sshll.u32 %s1037_s29, 8  ;;  %s272_s14 = scalar_lea.vmem [#allocation3], %s773_s11 }
  0x30   : > { %s1176_s18 = scalar_lea.hbm %s1274_s1, %s797_s12  ;;  %s279_s19 = sshll.u32 %s272_s14, 4  ;;  %s1182_s19 = int_to_ptr.vmem [resolvable:$true] %s279_s19 }
  0x31   : > { %p1178_p7 = pnand %p875_p3, %p65_p6  ;;  %s1184_s21 = scalar_lea.sflag [#allocation4], %s268_s26 }
  0x32   : > { %s971_s22 = scalar_lea.hbm %s1176_s18, 256  ;;  %s976_s11 = scalar_lea.hbm %s1274_s1, 512 }
  0x33   : > { %p972_p9 = scmp.ne.s32.totalorder %s1176_s18, %s971_s22  ;;  %p973_p10 = pneg %p1178_p7 }
  0x34   : > { %p977_p13 = scmp.lt.s32.totalorder %s1176_s18, %s1274_s1  ;;  %p978_p8 = scmp.lt.s32.totalorder %s976_s11, %s971_s22 }
  0x35   : > { %p974_p11 = pnand %p973_p10, %p972_p9 }
  0x36   : > { %p979_p0 = por %p978_p8, %p977_p13 }
  0x37   : > { %p975_p12 = pneg %p974_p11 }
  0x39   : > { %p980_p2 = pnand %p979_p0, %p975_p12 }
  0x3b   : > { %983 = shalt.err (!%p980_p2)
}
  0x3c   : > { %s984_s26 = scalar_lea.vmem %s1182_s19, 256  ;;  %s1043_s15 = smov [#allocation3]  }
  0x3d   : > { %p985_p3 = scmp.ne.s32.totalorder %s1182_s19, %s984_s26  ;;  %s989_s14 = sshll.u32 %s1043_s15, 4  ;;  %s990_s14 = int_to_ptr.vmem [resolvable:$false] %s989_s14 }
  0x3e   : > { %s991_s24 = scalar_lea.vmem %s990_s14, 512  ;;  %p992_p11 = scmp.lt.s32.totalorder %s1182_s19, %s990_s14 }
  0x3f   : > { %p987_p6 = pnand %p985_p3, %p973_p10  ;;  %p993_p1 = scmp.lt.s32.totalorder %s991_s24, %s984_s26 }
  0x41   : > { %p988_p9 = pneg %p987_p6  ;;  %p994_p4 = por %p993_p1, %p992_p11 }
  0x43   : > { %p995_p5 = pnand %p994_p4, %p988_p9 }
  0x45   : > { %998 = shalt.err (!%p995_p5)
}
  0x46   : > { %872 = dma.hbm_to_vmem [thread:$0]  (!%p1178_p7), %s1176_s18, 256, %s1182_s19, %s1184_s21, %s1041_s16, %s1041_s16, %s1042_s17  }
  0x47   : > { %p1290_p10 = scmp.ne.s32.totalorder %s1287_s9, 0 }
  0x48   : > { %s293_s22 = sand.u32 (!%p1290_p10), 1, %s1029_s27   ;;  %p1291_p1 = scmp.ne.s32.totalorder (!%p1290_p10), %s1286_s8, 0 }
  0x49   : > { %291 = sbr.rel (%p1290_p10) target bundleno = 639 (0x27f), region = 48  ;;  %s777_s25 = sshll.u32 (!%p1290_p10), %s293_s22, 4 }
  0x4a   : > { %s294_s11 = scalar_lea.sflag (!%p1290_p10), [#allocation4], %s293_s22  ;;  %s297_s12 = scalar_lea.vmem (!%p1290_p10), [#allocation3], %s777_s25 }
  0x4e   : > { %1016 = dma.done.wait (%p1291_p1), %s294_s11, 256  }
  0x4f   : > { %1018 = vsyncadd (%p1291_p1), %s294_s11, 4294967040  ;;  %p1292_p4 = scmp.ne.s32.totalorder %s1285_s30, 0 }
  0x51   : > { %1020 = dma.done.wait (%p1292_p4), [#allocation6], 1024  }
  0x52   : > { %1022 = vsyncadd (%p1292_p4), [#allocation6], 4294966272  ;;  %s780_s9 = sshll.u32 %s767_s6, 1  ;;  %vm373_vm0 = vcmask 1045504   ;;  %vm366_vm1 = vcmask 244736   ;;  %v364_v2 = vld [vmem:[#allocation7 + $0x10] sm:$0xff] }
  0x53   : > { %p342_p5 = scmp.lt.s32.totalorder %s780_s9, 3  ;;  %v365_v1 = vld [vmem:[#allocation7 + $0x18] sm:$0x3f]  ;;  %v360_v3 = vld [vmem:[%s297_s12] sm:$0xff]  ;;  %v363_v4 = vld [vmem:[#allocation7 + $0x8] sm:$0xff]  ;;  %vm566_vm2 = vcmask 1042432  }
  0x54   : > { %817 = vmatprep.subr.msk.mxu1 %vm373_vm0, %v365_v1  ;;  %825 = vmatprep.mubr.msk.f32.mxu1 %vm366_vm1, %v360_v3  ;;  %v362_v5 = vld [vmem:[#allocation7] sm:$0xff]  ;;  %v361_v6 = vld [vmem:[%s297_s12 + $0x8] sm:$0xff]  ;;  %v358_v9 = vld [vmem:[#allocation5 + $0x10] sm:$0xff]  ;;  %vm559_vm3 = vcmask 285696   ;;  %vm655_vm4 = vcmask 7168   ;;  %s1044_s29 = smov 1  }
  0x55   : > { %s1298_s9 = smov (!%p342_p5, %s780_s9), 3  ;;  %818 = vmatpush3.msk.msra.mxu1 %vm373_vm0, %v365_v1  ;;  %v359_v7 = vld [vmem:[#allocation5 + $0x18] sm:$0x3f]  ;;  %v357_v10 = vld [vmem:[#allocation5 + $0x8] sm:$0xff]  ;;  %v356_v11 = vld [vmem:[#allocation5] sm:$0xff]  ;;  %vm666_vm5 = vcmask 15368  }
  0x56   : > { %s781_s8 = sshll.u32 %s1298_s9, 3  ;;  %819 = vmatprep.subr.mxu1 %v364_v2  ;;  %v551_v13 = vld [vmem:[%s1278_s5 + $0x20] sm:$0x7]  ;;  %v550_v14 = vld [vmem:[%s1278_s5 + $0x18] sm:$0xff]  ;;  %v549_v15 = vld [vmem:[%s1278_s5 + $0x10] sm:$0xff] }
  0x57   : > { %820 = vmatpush3.msra.mxu1 %v364_v2  ;;  %s345_s30 = scalar_lea.vmem %s1273_s0, %s781_s8  ;;  %839 = vmatprep.subr.msk.mxu0 %vm566_vm2, %v551_v13  ;;  %v548_v16 = vld [vmem:[%s1278_s5 + $0x8] sm:$0xff]  ;;  %v547_v17 = vld [vmem:[%s1278_s5] sm:$0xff]  ;;  %s352_s12 = scalar_lea.vmem %s1280_s7, %s781_s8 }
  0x58   : > { %821 = vmatprep.subr.mxu1 %v363_v4  ;;  %v354_v8 = vld [vmem:[%s345_s30] sm:$0xff]  ;;  %v355_v12 = vld [vmem:[%s345_s30 + $0x8] sm:$0xff]  ;;  %840 = vmatpush3.msk.msra.mxu0 %vm566_vm2, %v551_v13 }
  0x59   : > { %822 = vmatpush3.msra.mxu1 %v363_v4  ;;  %841 = vmatprep.subr.mxu0 %v550_v14  ;;  %v790_v22 = vld [vmem:[%s1277_s4] ss:$0 sm:$0xff] }
  0x5a   : > { %823 = vmatprep.subr.mxu1 %v362_v5  ;;  %842 = vmatpush3.msra.mxu0 %v550_v14  ;;  %v791_v29 = vld [vmem:[#allocation2] ss:$0 sm:$0xff] }
  0x5b   : > { %824 = vmatpush3.msra.mxu1 %v362_v5  ;;  %843 = vmatprep.subr.mxu0 %v549_v15 }
  0x5c   : > { %826 = vmatmul.mubr.msk.f32.vlgmr.msra.gmra.mxu1 %vm366_vm1, %v361_v6  ;;  %828 = vmatprep.subr.msk.mxu1 %vm373_vm0, %v359_v7 }
  0x5d   : > { %829 = vmatpush3.msk.msra.mxu1 %vm373_vm0, %v359_v7  ;;  %836 = vmatprep.mubr.msk.f32.mxu1 %vm366_vm1, %v354_v8 }
  0x5e   : > { %830 = vmatprep.subr.mxu1 %v358_v9  ;;  %844 = vmatpush3.msra.mxu0 %v549_v15 }
  0x5f   : > { %831 = vmatpush3.msra.mxu1 %v358_v9  ;;  %845 = vmatprep.subr.mxu0 %v548_v16 }
  0x60   : > { %832 = vmatprep.subr.mxu1 %v357_v10  ;;  %846 = vmatpush3.msra.mxu0 %v548_v16 }
  0x61   : > { %833 = vmatpush3.msra.mxu1 %v357_v10  ;;  %847 = vmatprep.subr.mxu0 %v547_v17 }
  0x62   : > { %834 = vmatprep.subr.mxu1 %v356_v11  ;;  %848 = vmatpush3.msra.mxu0 %v547_v17 }
  0x63   : > { %835 = vmatpush3.msra.mxu1 %v356_v11 }
  0x64   : > { %837 = vmatmul.mubr.msk.f32.vlgmr.msra.gmra.mxu1 %vm366_vm1, %v355_v12 }
 0x11c   : > { %v827_v18 = vpop.f32.mrf.mxu1 }
 0x11e   : > { %v443_v19 = vpop.f32.mrf.mxu1 }
 0x124   : > { %v838_v20 = vpop.f32.mrf.mxu1 }
 0x125   : > { %v533_v21 = vadd.f32 %v838_v20, %v827_v18 }
 0x126   : > { %v527_v23 = vpop.f32.mrf.mxu1 }
 0x127   : > { %v528_v24 = vadd.f32 %v527_v23, %v443_v19  ;;  %v544_v25 = vadd.f32 %v790_v22, %v533_v21 }
 0x129   : > { %v543_v26 = vadd.f32 %v790_v22, %v528_v24  ;;  %v546_v28 = vmax.f32 %v544_v25, 0.0 }
 0x12b   : > { %v545_v27 = vmax.f32 %v543_v26, 0.0 }
 0x12d   : > { %849 = vmatprep.mubr.msk.f32.mxu0 %vm559_vm3, %v545_v27 }
 0x12e   : > { %850 = vmatmul.mubr.msk.f32.vlgmr.msra.gmra.mxu0 %vm559_vm3, %v546_v28 }
 0x1ee   : > { %v851_v30 = vpop.f32.mrf.mxu0 }
 0x1ef   : > { %v642_v31 = vadd.f32 %v851_v30, %v791_v29 }
 0x1f0   : > { %v636_v32 = vpop.f32.mrf.mxu0 }
 0x1f1   : > { %v646_v33 = vmul.f32 0.5, %v642_v31  ;;  %v637_v34 = vadd.f32 %v791_v29, %v636_v32 }
 0x1f3   : > { %915 = vtanh.f32 %v646_v33  ;;  %v645_v35 = vmul.f32 0.5, %v637_v34 }
 0x1f5   : > { %917 = vtanh.f32 %v645_v35 }
 0x200   : > { %v916_v36 = vpop.eup %915 }
 0x201   : > { %v650_v37 = vmul.f32 0.5, %v916_v36 }
 0x202   : > { %v918_v38 = vpop.eup %917 }
 0x203   : > { %v649_v39 = vmul.f32 0.5, %v918_v38  ;;  %v652_v40 = vadd.f32 0.5, %v650_v37 }
 0x205   : > { %v651_v41 = vadd.f32 0.5, %v649_v39  ;;  %v654_v43 = vsub.f32 1.0, %v652_v40 }
 0x207   : > { %660 = vrot.lane.b32.xlu0 %v651_v41, %s1044_s29  ;;  %v653_v42 = vsub.f32 1.0, %v651_v41  ;;  %657 = vst.msk [vmem:[%s352_s12 + $0x8] sm:$0xff] %vm655_vm4, %v654_v43 }
 0x209   : > { %656 = vst.msk [vmem:[%s352_s12] sm:$0xff] %vm655_vm4, %v653_v42 }
 0x20b   : > { %662 = vrot.lane.b32.xlu0 %v652_v40, %s1044_s29 }
 0x279   : > { %v661_v44 = vpop.permute.xlu0 %660 }
 0x27a   : > { %667 = vst.msk [vmem:[%s352_s12] sm:$0xff] %vm666_vm5, %v661_v44 }
 0x27d   : > { %v663_v45 = vpop.permute.xlu0 %662 }
 0x27e   : > { %668 = vst.msk [vmem:[%s352_s12 + $0x8] sm:$0xff] %vm666_vm5, %v663_v45 }
 0x27f PF: > { %p20_p7 = scmp.ge.s32.totalorder %s1159_s23, 4   ;;  %s1293_s26 = smov %s1029_s27 }
 0x280   : > { %s1294_s27 = smov %s1033_s28  ;;  %s1295_s28 = smov %s1170_s10 }
 0x281   : > { %s1296_s29 = smov %s1159_s23  ;;  %22 = sbr.rel (!%p20_p7) target bundleno = 7 (0x7), region = 99 }
 0x286   :  { %691 = vsyncpa [#allocation4], 1 }
 0x287   :  { %693 = vsyncpa [#allocation4 + $0x1], 1 }
 0x288   :  { %694 = vsyncpa [#allocation6], 1 }

</bundles_post_ra>
